<compile_context>
chip_gen: v7x
topology: tpu7x:2x2x1
jax: 0.10.0
libtpu: 0.0.40
codegen_flags: <defaults>
</compile_context>

<pallas_src>
import functools

import jax
import jax.numpy as jnp
import numpy as np
from jax import lax
from jax.experimental import pallas as pl
from jax.experimental.pallas import tpu as pltpu

_RING = 8  # in-flight row-gather DMA window / DMA-semaphore ring depth


# ---------------------------------------------------------------------------
# VMEM budgeting helpers
# ---------------------------------------------------------------------------
def _vmem_budget_bytes():
    try:
        cap = pltpu.get_tpu_info().vmem_capacity_bytes
    except Exception:
        cap = 64 * 1024 * 1024
    # Leave headroom for compiler scratch: ~48 MiB on v7x (64 MiB physical),
    # ~96 MiB on v5e/v6e (128 MiB physical).
    return min(int(cap * 3 // 4), 100 * 1024 * 1024)


def _choose_tile_t(T, P, D, elt, budget):
    """Largest sequence tile whose double-buffered output block fits the budget."""
    usable = budget - 2 * P * D * elt - (1 << 20)
    max_tile = max(8, usable // (2 * D * elt))
    if T <= max_tile:
        return T                                   # no tiling needed
    tile = int(max_tile // 8) * 8                  # keep (8, 128) block alignment
    tile = max(tile, 8, ((P + 7) // 8) * 8)        # soft prompt must fit in tile 0
    return min(tile, T)


# ---------------------------------------------------------------------------
# HBM-gather path: wte stays in HBM, rows are DMA'd straight into the output.
# ---------------------------------------------------------------------------
def _gather_kernel(ids_ref, sp_ref, wte_hbm, out_ref, sems, *, t_total, ring):
    # ids_ref : SMEM (B, S) int32        (scalar prefetch)
    # sp_ref  : VMEM (P, D)              soft prompt rows
    # wte_hbm : HBM  (V, D)              embedding table (never fully resident)
    # out_ref : VMEM (TILE_T, D)         output block for (batch b, seq tile t)
    # sems    : DMA semaphore ring (ring,)
    b = pl.program_id(0)
    t = pl.program_id(1)
    P = sp_ref.shape[0]
    tile_t = out_ref.shape[0]
    start = t * tile_t                              # first combined-seq row of tile

    # Soft-prompt rows live entirely in tile 0 (wrapper guarantees tile_t >= P).
    # One small P-row store; negligible vs. the token rows.
    @pl.when(t == 0)
    def _():
        out_ref[:P, :] = sp_ref[...]

    # Rows of this tile that are token-embedding rows: [r_lo, r_hi).
    r_lo = jnp.maximum(0, P - start)
    r_hi = jnp.minimum(tile_t, t_total - start)

    def row_copy(i):
        # Exact same descriptor is rebuilt for start() and wait().
        row = ids_ref[b, start + i - P]             # token id from SMEM
        return pltpu.make_async_copy(
            wte_hbm.at[pl.ds(row, 1), :],
            out_ref.at[pl.ds(i, 1), :],             # DMA straight into output block
            sems.at[i % ring],
        )

    # Windowed issue loop: at most `ring` row DMAs in flight.
    def issue_body(i, carry):
        @pl.when(i - r_lo >= ring)
        def _():
            row_copy(i - ring).wait()
        row_copy(i).start()
        return carry

    lax.fori_loop(r_lo, r_hi, issue_body, 0)

    # Drain remaining in-flight copies before the block is written back.
    def drain_body(i, carry):
        row_copy(i).wait()
        return carry

    lax.fori_loop(jnp.maximum(r_lo, r_hi - ring), r_hi, drain_body, 0)


def _gather_path(ids, soft_prompt, wte):
    B, S = ids.shape
    V, D = wte.shape
    P = soft_prompt.shape[0]
    T = P + S
    elt = jnp.dtype(wte.dtype).itemsize

    budget = _vmem_budget_bytes()
    tile_t = _choose_tile_t(T, P, D, elt, budget)
    nt = pl.cdiv(T, tile_t)

    # Exact VMEM request: double-buffered output tile + double-buffered soft
    # prompt + slack for the compiler's internal scratch.
    vmem_limit = 2 * tile_t * D * elt + 2 * P * D * elt + (1 << 20)
    vmem_limit = int(min(max(vmem_limit, 4 << 20), budget))

    cost = pl.CostEstimate(
        flops=0,
        transcendentals=0,
        bytes_accessed=int(B * (S * D + T * D + P * D) * elt + B * S * 4),
    )

    kernel = functools.partial(_gather_kernel, t_total=T, ring=_RING)
    return pl.pallas_call(
        kernel,
        out_shape=jax.ShapeDtypeStruct((B, T, D), wte.dtype),
        grid_spec=pltpu.PrefetchScalarGridSpec(
            num_scalar_prefetch=1,                  # input_ids -> SMEM, drive gather
            grid=(B, nt),                           # batch outer (parallel), seq tiles inner
            in_specs=[
                pl.BlockSpec((P, D), lambda b, t, ids: (0, 0)),   # soft prompt (tiny)
                pl.BlockSpec(memory_space=pl.ANY),                # wte stays in HBM
            ],
            out_specs=pl.BlockSpec((None, tile_t, D), lambda b, t, ids: (b, t, 0)),
            scratch_shapes=[pltpu.SemaphoreType.DMA((_RING,))],
        ),
        compiler_params=pltpu.CompilerParams(
            dimension_semantics=("parallel", "arbitrary"),
            vmem_limit_bytes=vmem_limit,
        ),
        cost_estimate=cost,
    )(ids, soft_prompt, wte)


# ---------------------------------------------------------------------------
# Small-table fast path: wte resident in VMEM, gather as one-hot MXU matmul.
# ---------------------------------------------------------------------------
def _fast_kernel(ids_ref, sp_ref, wte_ref, out_ref):
    # ids_ref : VMEM (1, S) int32; sp_ref: (P, D); wte_ref: (V, D); out_ref: (T, D)
    P = sp_ref.shape[0]
    V = wte_ref.shape[0]
    S = ids_ref.shape[1]
    out_ref[:P, :] = sp_ref[...]
    # One-hot built in the (V, S) orientation (no transpose/reshape of ids),
    # contracted on dim 0 against the resident table on the MXU.
    vocab_iota = lax.broadcasted_iota(jnp.int32, (V, S), 0)
    onehot_t = (vocab_iota == ids_ref[...]).astype(wte_ref.dtype)      # (V, S)
    tok = lax.dot_general(
        onehot_t, wte_ref[...],
        dimension_numbers=(((0,), (0,)), ((), ())),
        preferred_element_type=jnp.float32,
        precision=jax.lax.Precision.HIGHEST,
    )                                                                   # (S, D)
    out_ref[P:, :] = tok.astype(out_ref.dtype)


def _fast_path(ids, soft_prompt, wte):
    B, S = ids.shape
    V, D = wte.shape
    P = soft_prompt.shape[0]
    T = P + S
    elt = jnp.dtype(wte.dtype).itemsize

    ids3 = ids.reshape(B, 1, S)   # keep the id block's last-two dims == full dims

    vmem_limit = (2 * (V * D + T * D + P * D) * elt
                  + 2 * S * 4 + V * S * 4 + (1 << 20))
    vmem_limit = int(min(max(vmem_limit, 4 << 20), _vmem_budget_bytes()))

    cost = pl.CostEstimate(
        flops=2 * B * S * V * D,
        transcendentals=0,
        bytes_accessed=int(B * (V * D + T * D + P * D) * elt + B * S * 4),
    )

    return pl.pallas_call(
        _fast_kernel,
        out_shape=jax.ShapeDtypeStruct((B, T, D), wte.dtype),
        grid=(B,),
        in_specs=[
            pl.BlockSpec((None, 1, S), lambda b: (b, 0, 0)),   # ids (VMEM)
            pl.BlockSpec((P, D), lambda b: (0, 0)),            # soft prompt
            pl.BlockSpec((V, D), lambda b: (0, 0)),            # resident wte
        ],
        out_specs=pl.BlockSpec((None, T, D), lambda b: (b, 0, 0)),
        compiler_params=pltpu.CompilerParams(
            dimension_semantics=("parallel",),
            vmem_limit_bytes=vmem_limit,
        ),
        cost_estimate=cost,
    )(ids3, soft_prompt, wte)


# ---------------------------------------------------------------------------
# Wrapper (steps 1-4 of Model.forward for soft_prompt_tuning)
# ---------------------------------------------------------------------------
def soft_prompt_forward(input_ids, attention_mask, wte, soft_prompt,
                        *, force_hbm_gather=False):
    """input_ids: [B, S] int, attention_mask: [B, S], wte: [V, D], soft_prompt: [P, D].
    Returns (combined_embeddings [B, P+S, D], combined_attention_mask [B, P+S])."""
    B, S = input_ids.shape
    V, D = wte.shape
    P = soft_prompt.shape[0]
    elt = jnp.dtype(wte.dtype).itemsize

    # Clamp ids so padded / sentinel ids can never drive an out-of-bounds DMA.
    ids = jnp.clip(input_ids.astype(jnp.int32), 0, V - 1)

    # Small-table fast path: resident-VMEM one-hot gather beats per-row DMAs
    # (tiny rows are descriptor-overhead bound). Real vocabs take the HBM path.
    # NOTE: for real models D % 128 == 0, so the output stores are lane-dense.
    table_fits = (V * D * elt <= (4 << 20)) and (V * S * 4 <= (4 << 20))
    if table_fits and not force_hbm_gather:
        emb = _fast_path(ids, soft_prompt, wte)
    else:
        emb = _gather_path(ids, soft_prompt, wte)

    # combined_attention_mask = [ones(P), attention_mask]  (trivial; let XLA do it)
    combined_mask = jnp.concatenate(
        [jnp.ones((B, P), attention_mask.dtype), attention_mask], axis=1)
    return emb, combined_mask


if __name__ == "__main__":
    # Small, deterministic shapes consistent with the module's forward.
    B, S, D = 2, 8, 32          # batch, seq, n_embd
    P = 5                       # num_soft_prompt_tokens (module default)
    V = 64                      # vocab size (synthetic wte table)

    key = jax.random.PRNGKey(0)
    k_ids, k_wte, k_sp = jax.random.split(key, 3)

    input_ids = jax.random.randint(k_ids, (B, S), 0, V, dtype=jnp.int32)
    attention_mask = jnp.concatenate(
        [jnp.ones((B, S - 2), jnp.float32), jnp.zeros((B, 2), jnp.float32)], axis=1)
    # Deterministic synthetic parameters (wte table + soft prompt embedding).
    wte = jax.random.normal(k_wte, (V, D), jnp.float32) * 0.02
    soft_prompt = jax.random.normal(k_sp, (P, D), jnp.float32) * 0.02

    # Pure-JAX reference.
    ref_emb = jnp.concatenate(
        [jnp.broadcast_to(soft_prompt[None], (B, P, D)), wte[input_ids]], axis=1)
    ref_mask = jnp.concatenate([jnp.ones((B, P), jnp.float32), attention_mask], axis=1)

    # Exercise both paths: resident-table fast path and HBM row-gather path.
    emb_fast, mask_fast = soft_prompt_forward(input_ids, attention_mask, wte, soft_prompt)
    emb_gath, mask_gath = soft_prompt_forward(
        input_ids, attention_mask, wte, soft_prompt, force_hbm_gather=True)
    jax.block_until_ready((emb_fast, mask_fast, emb_gath, mask_gath))

    # Gather path is an exact copy; fast path uses a HIGHEST-precision one-hot
    # matmul (allow a tiny tolerance for the f32 MXU decomposition).
    np.testing.assert_allclose(np.asarray(emb_gath), np.asarray(ref_emb), rtol=0, atol=0)
    np.testing.assert_allclose(np.asarray(emb_fast), np.asarray(ref_emb),
                               rtol=1e-6, atol=1e-7)
    np.testing.assert_allclose(np.asarray(mask_gath), np.asarray(ref_mask), rtol=0, atol=0)
    np.testing.assert_allclose(np.asarray(mask_fast), np.asarray(ref_mask), rtol=0, atol=0)

    print("KERNEL_OK")
</pallas_src>

<mosaic_0001>
module attributes {stable_mosaic.version = 11 : i64} {
  func.func @_fast_kernel(%arg0: i32, %arg1: memref<1x1x8xi32, #tpu.memory_space<vmem>>, %arg2: memref<5x32xf32, #tpu.memory_space<vmem>>, %arg3: memref<64x32xf32, #tpu.memory_space<vmem>>, %arg4: memref<1x13x32xf32, #tpu.memory_space<vmem>>) attributes {dimension_semantics = [#tpu.dimension_semantics<parallel>], iteration_bounds = array<i64: 2>, scalar_prefetch = 0 : i64, scratch_operands = 0 : i64, tpu.core_type = #tpu.core_type<tc>, window_params = [{transform_indices = @transform_0, window_bounds = array<i64: 1, 1, 8>}, {pipeline_mode = #tpu.pipeline_mode<synchronous>, transform_indices = @transform_1, window_bounds = array<i64: 5, 32>}, {pipeline_mode = #tpu.pipeline_mode<synchronous>, transform_indices = @transform_2, window_bounds = array<i64: 64, 32>}, {transform_indices = @transform_3, window_bounds = array<i64: 1, 13, 32>}]} {
    %c0 = arith.constant 0 : index
    %c0_0 = arith.constant 0 : index
    %0 = vector.load %arg2[%c0, %c0_0] : memref<5x32xf32, #tpu.memory_space<vmem>>, vector<5x32xf32>
    %c0_1 = arith.constant 0 : index
    %c0_2 = arith.constant 0 : index
    %c0_3 = arith.constant 0 : index
    %1 = vector.load %arg4[%c0_1, %c0_2, %c0_3] : memref<1x13x32xf32, #tpu.memory_space<vmem>>, vector<1x5x32xf32>
    %2 = vector.shape_cast %1 : vector<1x5x32xf32> to vector<5x32xf32>
    %3 = vector.shape_cast %0 : vector<5x32xf32> to vector<1x5x32xf32>
    tpu.vector_store %arg4[%c0_1, %c0_2, %c0_3], %3 {strides = array<i32>} : memref<1x13x32xf32, #tpu.memory_space<vmem>>, vector<1x5x32xf32>,
    %4 = tpu.iota {dimensions = array<i32: 0>} : vector<64x8xi32>
    %c0_4 = arith.constant 0 : index
    %c0_5 = arith.constant 0 : index
    %c0_6 = arith.constant 0 : index
    %5 = vector.load %arg1[%c0_4, %c0_5, %c0_6] : memref<1x1x8xi32, #tpu.memory_space<vmem>>, vector<1x1x8xi32>
    %6 = vector.shape_cast %5 : vector<1x1x8xi32> to vector<1x8xi32>
    %7 = vector.broadcast %6 : vector<1x8xi32> to vector<64x8xi32>
    %8 = arith.cmpi eq, %4, %7 : vector<64x8xi32>
    %9 = arith.extui %8 : vector<64x8xi1> to vector<64x8xi32>
    %10 = arith.sitofp %9 : vector<64x8xi32> to vector<64x8xf32>
    %c0_7 = arith.constant 0 : index
    %c0_8 = arith.constant 0 : index
    %11 = vector.load %arg3[%c0_7, %c0_8] : memref<64x32xf32, #tpu.memory_space<vmem>>, vector<64x32xf32>
    %cst = arith.constant dense<0.000000e+00> : vector<8x32xf32>
    %12 = tpu.matmul %10, %11, %cst {dimension_numbers = #tpu.dot_dimension_numbers<[0], [0], [1], [1], [0, 1, 1, 1], [], []>, precision = #tpu.contract_precision<fp32>} : vector<64x8xf32>, vector<64x32xf32>, vector<8x32xf32> -> vector<8x32xf32>
    %c0_9 = arith.constant 0 : index
    %c5 = arith.constant 5 : index
    %c0_10 = arith.constant 0 : index
    %13 = vector.load %arg4[%c0_9, %c5, %c0_10] : memref<1x13x32xf32, #tpu.memory_space<vmem>>, vector<1x8x32xf32>
    %14 = vector.shape_cast %13 : vector<1x8x32xf32> to vector<8x32xf32>
    %15 = vector.shape_cast %12 : vector<8x32xf32> to vector<1x8x32xf32>
    tpu.vector_store %arg4[%c0_9, %c5, %c0_10], %15 {strides = array<i32>} : memref<1x13x32xf32, #tpu.memory_space<vmem>>, vector<1x8x32xf32>,
    return
  }
  func.func @transform_0(%arg0: i32) -> (i32, i32, i32) {
    %c0_i32 = arith.constant 0 : i32
    %c0_i32_0 = arith.constant 0 : i32
    %c0_i32_1 = arith.constant 0 : i32
    return %arg0, %c0_i32, %c0_i32_0 : i32, i32, i32
  }
  func.func @transform_1(%arg0: i32) -> (i32, i32) {
    %c0_i32 = arith.constant 0 : i32
    %c0_i32_0 = arith.constant 0 : i32
    %c0_i32_1 = arith.constant 0 : i32
    return %c0_i32, %c0_i32_0 : i32, i32
  }
  func.func @transform_2(%arg0: i32) -> (i32, i32) {
    %c0_i32 = arith.constant 0 : i32
    %c0_i32_0 = arith.constant 0 : i32
    %c0_i32_1 = arith.constant 0 : i32
    return %c0_i32, %c0_i32_0 : i32, i32
  }
  func.func @transform_3(%arg0: i32) -> (i32, i32, i32) {
    %c0_i32 = arith.constant 0 : i32
    %c0_i32_0 = arith.constant 0 : i32
    %c0_i32_1 = arith.constant 0 : i32
    return %arg0, %c0_i32, %c0_i32_0 : i32, i32, i32
  }
}

</mosaic_0001>

<bundles_post_ra>
// kernel: tpu_custom_call.1
= control target key start
LH: loop header
LB: loop body
LE: loop exit
PB: predicated region body
PF: predicated region fallthrough
CT: control target
= control target key end

     0   :  { %s1151_s12 = smov 0   ;;  %s1330_s0 = inlined_call_operand.vmem [shape: s32[2,1,8], index: 0, kind: input, shape index: {}]   ;;  %s1331_s1 = inlined_call_operand.vmem [shape: f32[5,32], index: 1, kind: input, shape index: {}]   ;;  %s1332_s2 = inlined_call_operand.vmem [shape: f32[64,32], index: 2, kind: input, shape index: {}]   ;;  %s1333_s3 = inlined_call_operand.vmem [shape: f32[2,13,32], index: 3, kind: output, shape index: {}]  }
   0x1 LB: > { %s841_s13 = sadd.s32 4294967295, %s1126_s12   ;;  %p845_p0 = scmp.ge.s32.totalorder %s1126_s12, 1  ;;  %s1126_s12 = sphi %s1151_s12, %s13_s12  }
   0x2   : > { %p135_p1 = scmp.lt.s32.totalorder %s1126_s12, 3 }
   0x4   : > { %p136_p2 = pnand %p845_p0, %p135_p1 }
   0x5   : > { %p157_p3 = scmp.lt.s32.totalorder (!%p136_p2), %s841_s13, 1  ;;  %v168_v0 = vlaneseq (!%p136_p2)  ;;  %v206_v1 = vld [vmem:[%s1332_s2] sm:$0xff] (!%p136_p2)  ;;  %v207_v2 = vld [vmem:[%s1332_s2 + $0x8] sm:$0xff] (!%p136_p2)  ;;  %v208_v3 = vld [vmem:[%s1332_s2 + $0x10] sm:$0xff] (!%p136_p2)  ;;  %v1128_v4 = vmov (!%p136_p2), 0.0|0.0   ;;  %v1129_v23 = vmov (!%p136_p2), 0.0  }
   0x6   : > { %139 = sbr.rel (%p136_p2) target bundleno = 405 (0x195), region = 32  ;;  %1064 = vmatprep.subr.bf16.mxu0 (!%p136_p2), %v1128_v4  ;;  %v251_v5 = vand.u32 (!%p136_p2), 4294901760, %v206_v1  ;;  %v254_v6 = vand.u32 (!%p136_p2), 4294901760, %v207_v2  ;;  %1028 = vmatprep.subr.bf16.mxu1 (!%p136_p2), %v1128_v4  ;;  %v209_v7 = vld [vmem:[%s1332_s2 + $0x18] sm:$0xff] (!%p136_p2)  ;;  %v257_v8 = vand.u32 (!%p136_p2), 4294901760, %v208_v3  ;;  %v210_v15 = vld [vmem:[%s1332_s2 + $0x20] sm:$0xff] (!%p136_p2) }
   0x7   : > { %v1175_v9 = vshrl.u32 (!%p136_p2), %v168_v0, 7  ;;  %v260_v10 = vand.u32 (!%p136_p2), 4294901760, %v209_v7  ;;  %v211_v16 = vld [vmem:[%s1332_s2 + $0x28] sm:$0xff] (!%p136_p2)  ;;  %v263_v21 = vand.u32 (!%p136_p2), 4294901760, %v210_v15  ;;  %v212_v26 = vld [vmem:[%s1332_s2 + $0x30] sm:$0xff] (!%p136_p2)  ;;  %v213_v27 = vld [vmem:[%s1332_s2 + $0x38] sm:$0xff] (!%p136_p2) }
   0x8   : > { %v1177_v11 = vpack.c.bf16 (!%p136_p2), %v254_v6, %v251_v5  ;;  %v1179_v12 = vsub.f32 (!%p136_p2), %v206_v1, %v251_v5  ;;  %v1181_v13 = vsub.f32 (!%p136_p2), %v207_v2, %v254_v6  ;;  %v1183_v14 = vsub.f32 (!%p136_p2), %v208_v3, %v257_v8 }
   0x9   : > { %v170_v17 = vadd.s32 (!%p136_p2), 8, %v1175_v9  ;;  %v171_v19 = vadd.s32 (!%p136_p2), 16, %v1175_v9  ;;  %v1201_v20 = vpack.c.bf16 (!%p136_p2), %v260_v10, %v257_v8  ;;  %v266_v22 = vand.u32 (!%p136_p2), 4294901760, %v211_v16 }
   0xa   : > { %1066 = vmatpush3.bf16.msra.mxu0 (!%p136_p2), %v1177_v11  ;;  %1030 = vmatpush3.bf16.msra.mxu1 (!%p136_p2), %v1177_v11  ;;  %v172_v25 = vadd.s32 (!%p136_p2), 24, %v1175_v9  ;;  %v1220_v29 = vsub.f32 (!%p136_p2), %v209_v7, %v260_v10  ;;  %v1225_v31 = vsub.f32 (!%p136_p2), %v210_v15, %v263_v21  ;;  %v173_v33 = vadd.s32 (!%p136_p2), 32, %v1175_v9 }
   0xb   : > { %1067 = vmatprep.subr.bf16.mxu0 (!%p136_p2), %v1128_v4  ;;  %1031 = vmatprep.subr.bf16.mxu1 (!%p136_p2), %v1128_v4  ;;  %v1223_v30 = vpack.c.bf16 (!%p136_p2), %v266_v22, %v263_v21  ;;  %v1227_v32 = vsub.f32 (!%p136_p2), %v211_v16, %v266_v22  ;;  %v269_v34 = vand.u32 (!%p136_p2), 4294901760, %v212_v26  ;;  %v272_v35 = vand.u32 (!%p136_p2), 4294901760, %v213_v27 }
   0xc   : > { %v336_v36 = vand.u32 (!%p136_p2), 4294901760, %v1179_v12  ;;  %v343_v37 = vand.u32 (!%p136_p2), 4294901760, %v1181_v13  ;;  %vm1130_vm4 = vmmov (!%p136_p2), 0   ;;  %v174_v46 = vadd.s32 (!%p136_p2), 40, %v1175_v9 }
   0xd   : > { %s1335_s13 = smov (!%p157_p3, %s841_s13), 1  ;;  %v1239_v39 = vpack.c.bf16 %v272_v35, %v269_v34  ;;  %v1241_v40 = vsub.f32 %v212_v26, %v269_v34  ;;  %v1243_v41 = vsub.f32 %v213_v27, %v272_v35  ;;  %987 = vmatprep.mubr.msk.f32.mxu0 %vm1130_vm4, %v1129_v23  ;;  %930 = vmatprep.mubr.msk.f32.mxu1 %vm1130_vm4, %v1129_v23  ;;  %v350_v49 = vand.u32 4294901760, %v1183_v14 }
   0xe   : > { %s159_s28 = scalar_lea.vmem %s1330_s0, %s1335_s13  ;;  %1069 = vmatpush3.bf16.msra.mxu0 %v1201_v20  ;;  %1033 = vmatpush3.bf16.msra.mxu1 %v1201_v20  ;;  %v1247_v42 = vpack.c.bf16 %v343_v37, %v336_v36  ;;  %v337_v43 = vsub.f32 %v1179_v12, %v336_v36  ;;  %v344_v44 = vsub.f32 %v1181_v13, %v343_v37  ;;  %v357_v50 = vand.u32 4294901760, %v1220_v29  ;;  %s859_s6 = sshll.u32 %s1335_s13, 4 }
   0xf   : > { %v1196_v18 = vld [vmem:[%s159_s28] ss:$0 sm:$0xff]  ;;  %1070 = vmatprep.subr.bf16.mxu0 %v1128_v4  ;;  %1034 = vmatprep.subr.bf16.mxu1 %v1128_v4  ;;  %v351_v53 = vsub.f32 %v1183_v14, %v350_v49  ;;  %v364_v58 = vand.u32 4294901760, %v1225_v31  ;;  %v371_v59 = vand.u32 4294901760, %v1227_v32  ;;  %v175_v60 = vadd.s32 48, %v1175_v9  ;;  %s164_s11 = scalar_lea.vmem %s1333_s3, %s859_s6 }
  0x10   : > { %vm182_vm0 = vcmp.eq.s32.totalorder %v1175_v9, %v1196_v18  ;;  %vm183_vm1 = vcmp.eq.s32.totalorder %v170_v17, %v1196_v18  ;;  %vm184_vm2 = vcmp.eq.s32.totalorder %v171_v19, %v1196_v18  ;;  %vm185_vm3 = vcmp.eq.s32.totalorder %v172_v25, %v1196_v18 }
  0x11   : > { %v849_v24 = vsel %vm182_vm0, 1.0, %v1129_v23  ;;  %v850_v28 = vsel %vm183_vm1, 1.0, %v1129_v23  ;;  %v851_v38 = vsel %vm184_vm2, 1.0, %v1129_v23  ;;  %v852_v45 = vsel %vm185_vm3, 1.0, %v1129_v23 }
  0x12   : > { %214 = vxpose.xlu0.b32.start [1/8] (short) (narrow) %v849_v24, 8  ;;  %1072 = vmatpush3.bf16.msra.mxu0 %v1223_v30  ;;  %vm186_vm5 = vcmp.eq.s32.totalorder %v173_v33, %v1196_v18  ;;  %v338_v47 = vand.u32 4294901760, %v337_v43  ;;  %v345_v48 = vand.u32 4294901760, %v344_v44  ;;  %v1080_v52 = vpack.c.bf16 %v357_v50, %v350_v49 }
  0x13   : > { %1036 = vmatpush3.bf16.msra.mxu1 %v1223_v30  ;;  %1073 = vmatprep.subr.bf16.mxu0 %v1128_v4  ;;  %v358_v54 = vsub.f32 %v1220_v29, %v357_v50  ;;  %v853_v55 = vsel %vm186_vm5, 1.0, %v1129_v23  ;;  %vm187_vm6 = vcmp.eq.s32.totalorder %v174_v46, %v1196_v18  ;;  %v352_v56 = vand.u32 4294901760, %v351_v53 }
  0x14   : > { %1037 = vmatprep.subr.bf16.mxu1 %v1128_v4  ;;  %v1041_v51 = vpack.c.bf16 %v345_v48, %v338_v47  ;;  %v1083_v62 = vpack.c.bf16 %v371_v59, %v364_v58  ;;  %v365_v63 = vsub.f32 %v1225_v31, %v364_v58  ;;  %v372_v0 = vsub.f32 %v1227_v32, %v371_v59 }
  0x15   : > { %v359_v57 = vand.u32 4294901760, %v358_v54  ;;  %v854_v1 = vsel %vm187_vm6, 1.0, %v1129_v23  ;;  %v378_v5 = vand.u32 4294901760, %v1241_v40  ;;  %v385_v6 = vand.u32 4294901760, %v1243_v41 }
  0x16   : > { %215 = vxpose.xlu0.b32.cont [2/8] (short) (narrow) %v850_v28, 8  ;;  %1075 = vmatpush3.bf16.msra.mxu0 %v1239_v39  ;;  %v366_v2 = vand.u32 4294901760, %v365_v63  ;;  %v373_v3 = vand.u32 4294901760, %v372_v0  ;;  %vm188_vm7 = vcmp.eq.s32.totalorder %v175_v60, %v1196_v18  ;;  %v176_v7 = vadd.s32 56, %v1175_v9 }
  0x17   : > { %1039 = vmatpush3.bf16.msra.mxu1 %v1239_v39  ;;  %1076 = vmatprep.subr.bf16.mxu0 %v1128_v4  ;;  %v1044_v61 = vpack.c.bf16 %v359_v57, %v352_v56  ;;  %v1086_v10 = vpack.c.bf16 %v385_v6, %v378_v5  ;;  %v379_v15 = vsub.f32 %v1241_v40, %v378_v5  ;;  %v855_v17 = vsel %vm188_vm7, 1.0, %v1129_v23 }
  0x18   : > { %1040 = vmatprep.subr.bf16.mxu1 %v1128_v4  ;;  %v1047_v8 = vpack.c.bf16 %v373_v3, %v366_v2  ;;  %v386_v16 = vsub.f32 %v1243_v41, %v385_v6  ;;  %vm189_vm8 = vcmp.eq.s32.totalorder %v176_v7, %v1196_v18  ;;  %v1053_v9 = vpack.c.bf16 %v1181_v13, %v1179_v12 }
  0x19   : > { %v380_v19 = vand.u32 4294901760, %v379_v15  ;;  %v856_v24 = vsel %vm189_vm8, 1.0, %v1129_v23  ;;  %v1056_v25 = vpack.c.bf16 %v1220_v29, %v1183_v14  ;;  %v1059_v26 = vpack.c.bf16 %v1227_v32, %v1225_v31 }
  0x1a   : > { %216 = vxpose.xlu0.b32.cont [3/8] (short) (narrow) %v851_v38, 8  ;;  %v387_v21 = vand.u32 4294901760, %v386_v16  ;;  %v1062_v27 = vpack.c.bf16 %v1243_v41, %v1241_v40  ;;  %vm246_vm9 = vcmask 523264   ;;  %vm166_vm10 = vcmask 258048  }
  0x1b   : > { %vm787_vm11 = vcmask 261120  }
  0x1c   : > { %v1050_v22 = vpack.c.bf16 %v387_v21, %v380_v19 }
  0x1e   : > { %217 = vxpose.xlu0.b32.cont [4/8] (short) (narrow) %v852_v45, 8 }
  0x22   : > { %218 = vxpose.xlu0.b32.cont [5/8] (short) (narrow) %v853_v55, 8 }
  0x26   : > { %219 = vxpose.xlu0.b32.cont [6/8] (short) (narrow) %v854_v1, 8 }
  0x2a   : > { %220 = vxpose.xlu0.b32.cont [7/8] (short) (narrow) %v855_v17, 8 }
  0x2e   : > { %221 = vxpose.xlu0.b32.end [8/8] (short) (narrow) %v856_v24, 8 }
  0x92   : > { %v230_v28 = vpop.trf.xlu0 }
  0x93   : > { %v248_v18 = vsel %vm246_vm9, %v230_v28, 0 }
  0x94   : > { %v323_v33 = vand.u32 4294901760, %v248_v18 }
  0x96   : > { %v324_v34 = vsub.f32 %v248_v18, %v323_v33 }
  0x98   : > { %v325_v35 = vand.u32 4294901760, %v324_v34 }
  0x9a   : > { %988 = vmatmul.mubr.f32.vlgmr.msra.gmra.mrb[0].mxu0 %v325_v35  ;;  %v326_v36 = vsub.f32 %v324_v34, %v325_v35 }
  0x9b   : > { %1078 = vmatpush3.bf16.msra.mxu0 %v1247_v42  ;;  %1006 = vmatprep.mubr.msk.f32.mxu0 %vm1130_vm4, %v1129_v23 }
  0x9c   : > { %1079 = vmatprep.subr.bf16.mxu0 %v1128_v4  ;;  %v327_v12 = vand.u32 4294901760, %v326_v36 }
  0x9e   : > { %931 = vmatmul.mubr.f32.vlgmr.msra.gmra.mrb[0].mxu1 %v327_v12 }
  0x9f   : > { %1042 = vmatpush3.bf16.msra.mxu1 %v1041_v51  ;;  %1081 = vmatpush3.bf16.msra.mxu0 %v1080_v52 }
  0xa0   : > { %1043 = vmatprep.subr.bf16.mxu1 %v1128_v4  ;;  %1082 = vmatprep.subr.bf16.mxu0 %v1128_v4 }
  0xa1   : > { %949 = vmatprep.mubr.msk.f32.mxu1 %vm1130_vm4, %v1129_v23 }
  0xa3   : > { %1045 = vmatpush3.bf16.msra.mxu1 %v1044_v61  ;;  %1084 = vmatpush3.bf16.msra.mxu0 %v1083_v62 }
  0xa4   : > { %1046 = vmatprep.subr.bf16.mxu1 %v1128_v4  ;;  %1085 = vmatprep.subr.bf16.mxu0 %v1128_v4 }
  0xa7   : > { %1048 = vmatpush3.bf16.msra.mxu1 %v1047_v8  ;;  %1087 = vmatpush3.bf16.msra.mxu0 %v1086_v10 }
  0xa8   : > { %1049 = vmatprep.subr.bf16.mxu1 %v1128_v4  ;;  %1088 = vmatprep.subr.bf16.mxu0 %v1128_v4 }
  0xaa   : > { %1007 = vmatmul.mubr.f32.vlgmr.msra.gmra.mrb[0].mxu0 %v323_v33 }
  0xab   : > { %1051 = vmatpush3.bf16.msra.mxu1 %v1050_v22  ;;  %1090 = vmatpush3.bf16.msra.mxu0 %v1177_v11  ;;  %v165_v11 = vld [vmem:[%s1331_s1] sm:$0x1f] }
  0xac   : > { %1052 = vmatprep.subr.bf16.mxu1 %v1128_v4  ;;  %1091 = vmatprep.subr.bf16.mxu0 %v1128_v4  ;;  %167 = vst.msk [vmem:[%s164_s11] sm:$0x1f] %vm166_vm10, %v165_v11 }
  0xad   : > { %1025 = vmatprep.mubr.msk.f32.mxu0 %vm1130_vm4, %v1129_v23 }
  0xae   : > { %950 = vmatmul.mubr.f32.vlgmr.msra.gmra.mrb[0].mxu1 %v323_v33 }
  0xaf   : > { %1054 = vmatpush3.bf16.msra.mxu1 %v1053_v9  ;;  %1093 = vmatpush3.bf16.msra.mxu0 %v1201_v20 }
  0xb0   : > { %1055 = vmatprep.subr.bf16.mxu1 %v1128_v4  ;;  %1094 = vmatprep.subr.bf16.mxu0 %v1128_v4 }
  0xb1   : > { %968 = vmatprep.mubr.msk.f32.mxu1 %vm1130_vm4, %v1129_v23 }
  0xb3   : > { %1057 = vmatpush3.bf16.msra.mxu1 %v1056_v25  ;;  %1096 = vmatpush3.bf16.msra.mxu0 %v1223_v30 }
  0xb4   : > { %1058 = vmatprep.subr.bf16.mxu1 %v1128_v4  ;;  %1097 = vmatprep.subr.bf16.mxu0 %v1128_v4 }
  0xb7   : > { %1060 = vmatpush3.bf16.msra.mxu1 %v1059_v26  ;;  %1099 = vmatpush3.bf16.msra.mxu0 %v1239_v39 }
  0xb8   : > { %1061 = vmatprep.subr.bf16.mxu1 %v1128_v4 }
  0xba   : > { %1026 = vmatmul.mubr.f32.vlgmr.msra.gmra.mrb[0].mxu0 %v323_v33 }
  0xbb   : > { %1063 = vmatpush3.bf16.msra.mxu1 %v1062_v27 }
  0xbe   : > { %969 = vmatmul.mubr.f32.vlgmr.msra.gmra.mrb[0].mxu1 %v324_v34 }
 0x18d   : > { %v783_v13 = vpop.f32.mrb[0].mxu0 }
 0x18e   : > { %v1027_v14 = vpop.f32.mrb[1].mxu0 }
 0x191   : > { %v528_v20 = vpop.f32.mrb[0].mxu1 }
 0x192   : > { %v1100_v23 = vadd.f32 %v783_v13, %v528_v20  ;;  %v970_v4 = vpop.f32.mrb[1].mxu1 }
 0x194   : > { %788 = vst.msk [vmem:[%s164_s11 + $0x5] sm:$0xff] %vm787_vm11, %v1100_v23 }
 0x195 PF: > { %s13_s12 = sadd.s32 1, %s1126_s12  }
 0x196   : > { %p10_p4 = scmp.ge.s32.totalorder %s13_s12, 4  }
 0x198   :  { %12 = sbr.rel (!%p10_p4) target bundleno = 1 (0x1), region = 62 }

</bundles_post_ra>
